<compile_context>
chip_gen: v5e
topology: v5e:2x2
jax: 0.10.0
libtpu: 0.0.40
codegen_flags: <defaults>
</compile_context>

<pallas_src>
import math

import jax
import jax.numpy as jnp
from jax import lax
from jax.experimental import pallas as pl
from jax.experimental.pallas import tpu as pltpu

# ---------------- problem sizes (small, consistent with the module) -------------
N = 64          # number of points / pulses
F = 8           # feature dim (first 3 = xyz)
H = 32          # hidden dim of the synthetic model
OUT = 4         # model output per angle: (x, y, z, kappa)

ANGLES_DEG = [0, 180]
ANGLES = [a * math.pi / 180.0 for a in ANGLES_DEG]
NUM_ANGLES = len(ANGLES)
WEIGHT = 1.0 / NUM_ANGLES
COS_A = [math.cos(a) for a in ANGLES]
SIN_A = [math.sin(a) for a in ANGLES]

AH = NUM_ANGLES * H        # 64  (angle-batched hidden width)
AOUT = NUM_ANGLES * OUT    # 8   (angle-batched output width)
OUT_COLS = 2 + 2 * NUM_ANGLES   # [sin_acc, cos_acc, rho_0, z_0, rho_1, z_1]


def rotz_full(theta: float, f: int) -> jnp.ndarray:
    """Full-feature rotation: identity except rotz on the first 3 dims.

    x @ R_full == torch semantics of data.x[:, :3] = x[:, :3] @ rotz(theta)
    with all other feature columns untouched.
    """
    c, s = math.cos(theta), math.sin(theta)
    r = jnp.eye(f, dtype=jnp.float32)
    r = r.at[0, 0].set(c).at[0, 1].set(-s)
    r = r.at[1, 0].set(s).at[1, 1].set(c)
    return r


# ------------------------------- Pallas kernel ----------------------------------
def tta_kernel(x_ref, w1_ref, b1_ref, w2_ref, b2_ref, out_ref):
    x = x_ref[...]                                   # (N, F)

    # One wide MLP covering all TTA angles (rotation already folded into W1,
    # W2 is block-diagonal so each angle only sees its own hidden block).
    h = jnp.maximum(
        jnp.dot(x, w1_ref[...], preferred_element_type=jnp.float32)
        + b1_ref[...], 0.0)                          # (N, A*H)
    pred = jnp.dot(h, w2_ref[...],
                   preferred_element_type=jnp.float32) + b2_ref[...]   # (N, A*OUT)

    sin_acc = jnp.zeros((N, 1), jnp.float32)
    cos_acc = jnp.zeros((N, 1), jnp.float32)
    zen_cols = []

    for ai in range(NUM_ANGLES):                     # static unrolled, VPU-only
        base = ai * OUT
        px = pred[:, base + 0:base + 1]
        py = pred[:, base + 1:base + 2]
        pz = pred[:, base + 2:base + 3]

        # azi = atan2(py, px); zen = acos(pz/r) = atan2(rho, pz)
        r2 = px * px + py * py
        inv_r = lax.rsqrt(r2)                        # one EUP op instead of sqrt + 2 div
        valid = r2 > 0.0
        sin_azi = jnp.where(valid, py * inv_r, 0.0)  # sin(atan2(py, px))
        cos_azi = jnp.where(valid, px * inv_r, 1.0)  # cos(atan2(py, px))
        rho = jnp.where(valid, r2 * inv_r, 0.0)      # sqrt(px^2 + py^2)

        # a_out = azi + a ; accumulate weight * sin/cos(a_out) via angle addition
        sin_acc = sin_acc + WEIGHT * (sin_azi * COS_A[ai] + cos_azi * SIN_A[ai])
        cos_acc = cos_acc + WEIGHT * (cos_azi * COS_A[ai] - sin_azi * SIN_A[ai])

        # zenith pieces for the atan2(rho, z) epilogue
        zen_cols.append(rho)
        zen_cols.append(pz)

    # single lane-contiguous store of all results
    out_ref[...] = jnp.concatenate([sin_acc, cos_acc] + zen_cols, axis=1)


# ------------------------------ wrapper ------------------------------------------
def tta_forward(x, rots, w1, b1, w2, b2):
    # host-side (XLA) weight folding: rotation into W1, angle-batched weights
    w1_cat = jnp.concatenate(
        [rots[ai] @ w1 for ai in range(NUM_ANGLES)], axis=1)        # (F, A*H)
    b1_cat = jnp.tile(b1, (1, NUM_ANGLES))                          # (1, A*H)
    w2_blk = jnp.zeros((AH, AOUT), jnp.float32)
    for ai in range(NUM_ANGLES):
        w2_blk = w2_blk.at[ai * H:(ai + 1) * H,
                           ai * OUT:(ai + 1) * OUT].set(w2)         # (A*H, A*OUT)
    b2_cat = jnp.tile(b2, (1, NUM_ANGLES))                          # (1, A*OUT)

    out = pl.pallas_call(
        tta_kernel,
        out_shape=jax.ShapeDtypeStruct((N, OUT_COLS), jnp.float32),
        grid=(1,),
        in_specs=[
            pl.BlockSpec((N, F), lambda i: (0, 0)),
            pl.BlockSpec((F, AH), lambda i: (0, 0)),
            pl.BlockSpec((1, AH), lambda i: (0, 0)),
            pl.BlockSpec((AH, AOUT), lambda i: (0, 0)),
            pl.BlockSpec((1, AOUT), lambda i: (0, 0)),
        ],
        out_specs=pl.BlockSpec((N, OUT_COLS), lambda i: (0, 0)),
        compiler_params=pltpu.CompilerParams(
            dimension_semantics=("parallel",)),
    )(x, w1_cat, b1_cat, w2_blk, b2_cat)

    # tiny elementwise epilogue (angle extraction) in plain JAX
    azi_out = jnp.arctan2(out[:, 0], out[:, 1])
    zen_out = jnp.zeros((N,), jnp.float32)
    for ai in range(NUM_ANGLES):
        zen_out = zen_out + WEIGHT * jnp.arctan2(
            out[:, 2 + 2 * ai], out[:, 3 + 2 * ai])
    return azi_out, zen_out


# -------------------------- pure-JAX reference ------------------------------------
def tta_reference(x, rots, w1, b1, w2, b2):
    azi_sin = 0.0
    azi_cos = 0.0
    zen = 0.0
    for a, r in zip(ANGLES, rots):
        xr = x @ r
        h = jax.nn.relu(xr @ w1 + b1)
        pred = h @ w2 + b2
        azi = jnp.arctan2(pred[:, 1], pred[:, 0])
        zzen = jnp.arccos(pred[:, 2] / jnp.linalg.norm(pred[:, :3], axis=1))
        a_out = azi + a
        azi_sin = azi_sin + WEIGHT * jnp.sin(a_out)
        azi_cos = azi_cos + WEIGHT * jnp.cos(a_out)
        zen = zen + WEIGHT * zzen
    return jnp.arctan2(azi_sin, azi_cos), zen


if __name__ == "__main__":
    key = jax.random.PRNGKey(0)
    kx, k1, k2, kb1, kb2 = jax.random.split(key, 5)

    x = jax.random.normal(kx, (N, F), jnp.float32)
    w1 = jax.random.normal(k1, (F, H), jnp.float32) * 0.3
    b1 = jax.random.normal(kb1, (1, H), jnp.float32) * 0.1
    w2 = jax.random.normal(k2, (H, OUT), jnp.float32) * 0.3
    b2 = jax.random.normal(kb2, (1, OUT), jnp.float32) * 0.1
    rots = jnp.stack([rotz_full(a, F) for a in ANGLES], axis=0)   # (A, F, F)

    azi, zen = jax.jit(tta_forward)(x, rots, w1, b1, w2, b2)
    jax.block_until_ready((azi, zen))

    azi_ref, zen_ref = tta_reference(x, rots, w1, b1, w2, b2)
    assert jnp.allclose(azi, azi_ref, atol=1e-3, rtol=1e-3), "azimuth mismatch"
    assert jnp.allclose(zen, zen_ref, atol=1e-3, rtol=1e-3), "zenith mismatch"

    print("KERNEL_OK")
</pallas_src>

<mosaic_0001>
module attributes {stable_mosaic.version = 11 : i64} {
  func.func @tta_kernel(%arg0: i32, %arg1: memref<64x8xf32, #tpu.memory_space<vmem>>, %arg2: memref<8x64xf32, #tpu.memory_space<vmem>>, %arg3: memref<1x64xf32, #tpu.memory_space<vmem>>, %arg4: memref<64x8xf32, #tpu.memory_space<vmem>>, %arg5: memref<1x8xf32, #tpu.memory_space<vmem>>, %arg6: memref<64x6xf32, #tpu.memory_space<vmem>>) attributes {dimension_semantics = [#tpu.dimension_semantics<parallel>], iteration_bounds = array<i64: 1>, scalar_prefetch = 0 : i64, scratch_operands = 0 : i64, tpu.core_type = #tpu.core_type<tc>, window_params = [{pipeline_mode = #tpu.pipeline_mode<synchronous>, transform_indices = @transform_0, window_bounds = array<i64: 64, 8>}, {pipeline_mode = #tpu.pipeline_mode<synchronous>, transform_indices = @transform_1, window_bounds = array<i64: 8, 64>}, {pipeline_mode = #tpu.pipeline_mode<synchronous>, transform_indices = @transform_2, window_bounds = array<i64: 1, 64>}, {pipeline_mode = #tpu.pipeline_mode<synchronous>, transform_indices = @transform_3, window_bounds = array<i64: 64, 8>}, {pipeline_mode = #tpu.pipeline_mode<synchronous>, transform_indices = @transform_4, window_bounds = array<i64: 1, 8>}, {pipeline_mode = #tpu.pipeline_mode<synchronous>, transform_indices = @transform_5, window_bounds = array<i64: 64, 6>}]} {
    %c0 = arith.constant 0 : index
    %c0_0 = arith.constant 0 : index
    %0 = vector.load %arg1[%c0, %c0_0] : memref<64x8xf32, #tpu.memory_space<vmem>>, vector<64x8xf32>
    %c0_1 = arith.constant 0 : index
    %c0_2 = arith.constant 0 : index
    %1 = vector.load %arg2[%c0_1, %c0_2] : memref<8x64xf32, #tpu.memory_space<vmem>>, vector<8x64xf32>
    %cst = arith.constant dense<0.000000e+00> : vector<64x64xf32>
    %2 = tpu.matmul %0, %1, %cst {dimension_numbers = #tpu.dot_dimension_numbers<[1], [0], [0], [1], [0, 0, 1, 1], [], []>} : vector<64x8xf32>, vector<8x64xf32>, vector<64x64xf32> -> vector<64x64xf32>
    %c0_3 = arith.constant 0 : index
    %c0_4 = arith.constant 0 : index
    %3 = vector.load %arg3[%c0_3, %c0_4] : memref<1x64xf32, #tpu.memory_space<vmem>>, vector<1x64xf32>
    %4 = vector.broadcast %3 : vector<1x64xf32> to vector<64x64xf32>
    %5 = arith.addf %2, %4 : vector<64x64xf32>
    %cst_5 = arith.constant 0.000000e+00 : f32
    %6 = vector.broadcast %cst_5 : f32 to vector<64x64xf32>
    %7 = arith.maximumf %5, %6 : vector<64x64xf32>
    %c0_6 = arith.constant 0 : index
    %c0_7 = arith.constant 0 : index
    %8 = vector.load %arg4[%c0_6, %c0_7] : memref<64x8xf32, #tpu.memory_space<vmem>>, vector<64x8xf32>
    %cst_8 = arith.constant dense<0.000000e+00> : vector<64x8xf32>
    %9 = tpu.matmul %7, %8, %cst_8 {dimension_numbers = #tpu.dot_dimension_numbers<[1], [0], [0], [1], [0, 0, 1, 1], [], []>} : vector<64x64xf32>, vector<64x8xf32>, vector<64x8xf32> -> vector<64x8xf32>
    %c0_9 = arith.constant 0 : index
    %c0_10 = arith.constant 0 : index
    %10 = vector.load %arg5[%c0_9, %c0_10] : memref<1x8xf32, #tpu.memory_space<vmem>>, vector<1x8xf32>
    %11 = vector.broadcast %10 : vector<1x8xf32> to vector<64x8xf32>
    %12 = arith.addf %9, %11 : vector<64x8xf32>
    %cst_11 = arith.constant 0.000000e+00 : f32
    %13 = vector.broadcast %cst_11 : f32 to vector<64x1xf32>
    %cst_12 = arith.constant 0.000000e+00 : f32
    %14 = vector.broadcast %cst_12 : f32 to vector<64x1xf32>
    %15 = vector.extract_strided_slice %12 {offsets = [0, 0], sizes = [64, 1], strides = [1, 1]} : vector<64x8xf32> to vector<64x1xf32>
    %16 = vector.extract_strided_slice %12 {offsets = [0, 1], sizes = [64, 1], strides = [1, 1]} : vector<64x8xf32> to vector<64x1xf32>
    %17 = vector.extract_strided_slice %12 {offsets = [0, 2], sizes = [64, 1], strides = [1, 1]} : vector<64x8xf32> to vector<64x1xf32>
    %18 = arith.mulf %15, %15 : vector<64x1xf32>
    %19 = arith.mulf %16, %16 : vector<64x1xf32>
    %20 = arith.addf %18, %19 : vector<64x1xf32>
    %21 = math.rsqrt %20 : vector<64x1xf32>
    %cst_13 = arith.constant 0.000000e+00 : f32
    %22 = vector.broadcast %cst_13 : f32 to vector<64x1xf32>
    %23 = arith.cmpf ogt, %20, %22 : vector<64x1xf32>
    %24 = arith.mulf %16, %21 : vector<64x1xf32>
    %cst_14 = arith.constant 0.000000e+00 : f32
    %25 = vector.broadcast %cst_14 : f32 to vector<64x1xf32>
    %26 = arith.select %23, %24, %25 : vector<64x1xi1>, vector<64x1xf32>
    %27 = arith.mulf %15, %21 : vector<64x1xf32>
    %cst_15 = arith.constant 1.000000e+00 : f32
    %28 = vector.broadcast %cst_15 : f32 to vector<64x1xf32>
    %29 = arith.select %23, %27, %28 : vector<64x1xi1>, vector<64x1xf32>
    %30 = arith.mulf %20, %21 : vector<64x1xf32>
    %cst_16 = arith.constant 0.000000e+00 : f32
    %31 = vector.broadcast %cst_16 : f32 to vector<64x1xf32>
    %32 = arith.select %23, %30, %31 : vector<64x1xi1>, vector<64x1xf32>
    %cst_17 = arith.constant 1.000000e+00 : f32
    %33 = vector.broadcast %cst_17 : f32 to vector<64x1xf32>
    %34 = arith.mulf %26, %33 : vector<64x1xf32>
    %cst_18 = arith.constant 0.000000e+00 : f32
    %35 = vector.broadcast %cst_18 : f32 to vector<64x1xf32>
    %36 = arith.mulf %29, %35 : vector<64x1xf32>
    %37 = arith.addf %34, %36 : vector<64x1xf32>
    %cst_19 = arith.constant 5.000000e-01 : f32
    %38 = vector.broadcast %cst_19 : f32 to vector<64x1xf32>
    %39 = arith.mulf %38, %37 : vector<64x1xf32>
    %40 = arith.addf %13, %39 : vector<64x1xf32>
    %cst_20 = arith.constant 1.000000e+00 : f32
    %41 = vector.broadcast %cst_20 : f32 to vector<64x1xf32>
    %42 = arith.mulf %29, %41 : vector<64x1xf32>
    %cst_21 = arith.constant 0.000000e+00 : f32
    %43 = vector.broadcast %cst_21 : f32 to vector<64x1xf32>
    %44 = arith.mulf %26, %43 : vector<64x1xf32>
    %45 = arith.subf %42, %44 : vector<64x1xf32>
    %cst_22 = arith.constant 5.000000e-01 : f32
    %46 = vector.broadcast %cst_22 : f32 to vector<64x1xf32>
    %47 = arith.mulf %46, %45 : vector<64x1xf32>
    %48 = arith.addf %14, %47 : vector<64x1xf32>
    %49 = vector.extract_strided_slice %12 {offsets = [0, 4], sizes = [64, 1], strides = [1, 1]} : vector<64x8xf32> to vector<64x1xf32>
    %50 = vector.extract_strided_slice %12 {offsets = [0, 5], sizes = [64, 1], strides = [1, 1]} : vector<64x8xf32> to vector<64x1xf32>
    %51 = vector.extract_strided_slice %12 {offsets = [0, 6], sizes = [64, 1], strides = [1, 1]} : vector<64x8xf32> to vector<64x1xf32>
    %52 = arith.mulf %49, %49 : vector<64x1xf32>
    %53 = arith.mulf %50, %50 : vector<64x1xf32>
    %54 = arith.addf %52, %53 : vector<64x1xf32>
    %55 = math.rsqrt %54 : vector<64x1xf32>
    %cst_23 = arith.constant 0.000000e+00 : f32
    %56 = vector.broadcast %cst_23 : f32 to vector<64x1xf32>
    %57 = arith.cmpf ogt, %54, %56 : vector<64x1xf32>
    %58 = arith.mulf %50, %55 : vector<64x1xf32>
    %cst_24 = arith.constant 0.000000e+00 : f32
    %59 = vector.broadcast %cst_24 : f32 to vector<64x1xf32>
    %60 = arith.select %57, %58, %59 : vector<64x1xi1>, vector<64x1xf32>
    %61 = arith.mulf %49, %55 : vector<64x1xf32>
    %cst_25 = arith.constant 1.000000e+00 : f32
    %62 = vector.broadcast %cst_25 : f32 to vector<64x1xf32>
    %63 = arith.select %57, %61, %62 : vector<64x1xi1>, vector<64x1xf32>
    %64 = arith.mulf %54, %55 : vector<64x1xf32>
    %cst_26 = arith.constant 0.000000e+00 : f32
    %65 = vector.broadcast %cst_26 : f32 to vector<64x1xf32>
    %66 = arith.select %57, %64, %65 : vector<64x1xi1>, vector<64x1xf32>
    %cst_27 = arith.constant -1.000000e+00 : f32
    %67 = vector.broadcast %cst_27 : f32 to vector<64x1xf32>
    %68 = arith.mulf %60, %67 : vector<64x1xf32>
    %cst_28 = arith.constant 1.22464685E-16 : f32
    %69 = vector.broadcast %cst_28 : f32 to vector<64x1xf32>
    %70 = arith.mulf %63, %69 : vector<64x1xf32>
    %71 = arith.addf %68, %70 : vector<64x1xf32>
    %cst_29 = arith.constant 5.000000e-01 : f32
    %72 = vector.broadcast %cst_29 : f32 to vector<64x1xf32>
    %73 = arith.mulf %72, %71 : vector<64x1xf32>
    %74 = arith.addf %40, %73 : vector<64x1xf32>
    %cst_30 = arith.constant -1.000000e+00 : f32
    %75 = vector.broadcast %cst_30 : f32 to vector<64x1xf32>
    %76 = arith.mulf %63, %75 : vector<64x1xf32>
    %cst_31 = arith.constant 1.22464685E-16 : f32
    %77 = vector.broadcast %cst_31 : f32 to vector<64x1xf32>
    %78 = arith.mulf %60, %77 : vector<64x1xf32>
    %79 = arith.subf %76, %78 : vector<64x1xf32>
    %cst_32 = arith.constant 5.000000e-01 : f32
    %80 = vector.broadcast %cst_32 : f32 to vector<64x1xf32>
    %81 = arith.mulf %80, %79 : vector<64x1xf32>
    %82 = arith.addf %48, %81 : vector<64x1xf32>
    %83 = tpu.concatenate %74, %82, %32, %17, %66, %51 in 1 : vector<64x1xf32>, vector<64x1xf32>, vector<64x1xf32>, vector<64x1xf32>, vector<64x1xf32>, vector<64x1xf32> -> vector<64x6xf32>
    %c0_33 = arith.constant 0 : index
    %c0_34 = arith.constant 0 : index
    %84 = vector.load %arg6[%c0_33, %c0_34] : memref<64x6xf32, #tpu.memory_space<vmem>>, vector<64x6xf32>
    tpu.vector_store %arg6[%c0_33, %c0_34], %83 {strides = array<i32>} : memref<64x6xf32, #tpu.memory_space<vmem>>, vector<64x6xf32>,
    return
  }
  func.func @transform_0(%arg0: i32) -> (i32, i32) {
    %c0_i32 = arith.constant 0 : i32
    %c0_i32_0 = arith.constant 0 : i32
    %c0_i32_1 = arith.constant 0 : i32
    return %c0_i32, %c0_i32_0 : i32, i32
  }
  func.func @transform_1(%arg0: i32) -> (i32, i32) {
    %c0_i32 = arith.constant 0 : i32
    %c0_i32_0 = arith.constant 0 : i32
    %c0_i32_1 = arith.constant 0 : i32
    return %c0_i32, %c0_i32_0 : i32, i32
  }
  func.func @transform_2(%arg0: i32) -> (i32, i32) {
    %c0_i32 = arith.constant 0 : i32
    %c0_i32_0 = arith.constant 0 : i32
    %c0_i32_1 = arith.constant 0 : i32
    return %c0_i32, %c0_i32_0 : i32, i32
  }
  func.func @transform_3(%arg0: i32) -> (i32, i32) {
    %c0_i32 = arith.constant 0 : i32
    %c0_i32_0 = arith.constant 0 : i32
    %c0_i32_1 = arith.constant 0 : i32
    return %c0_i32, %c0_i32_0 : i32, i32
  }
  func.func @transform_4(%arg0: i32) -> (i32, i32) {
    %c0_i32 = arith.constant 0 : i32
    %c0_i32_0 = arith.constant 0 : i32
    %c0_i32_1 = arith.constant 0 : i32
    return %c0_i32, %c0_i32_0 : i32, i32
  }
  func.func @transform_5(%arg0: i32) -> (i32, i32) {
    %c0_i32 = arith.constant 0 : i32
    %c0_i32_0 = arith.constant 0 : i32
    %c0_i32_1 = arith.constant 0 : i32
    return %c0_i32, %c0_i32_0 : i32, i32
  }
}

</mosaic_0001>

<bundles_post_ra>
// kernel: tta_forward.1
= control target key start
LH: loop header
LB: loop body
LE: loop exit
PB: predicated region body
PF: predicated region fallthrough
CT: control target
= control target key end

     0   :  { %vm33_vm0 = vcmask 64512   ;;  %vm119_vm1 = vcmask 523264   ;;  %s876_s27 = smov 2   ;;  %s877_s28 = smov 124   ;;  %s1530_s1 = inlined_call_operand.vmem [shape: f32[8,64], index: 1, kind: input, shape index: {}]   ;;  %s1531_s0 = inlined_call_operand.vmem [shape: f32[64,8], index: 0, kind: input, shape index: {}]   ;;  %s1532_s3 = inlined_call_operand.vmem [shape: f32[64,8], index: 3, kind: input, shape index: {}]   ;;  %s1533_s2 = inlined_call_operand.vmem [shape: f32[1,64], index: 2, kind: input, shape index: {}]   ;;  %s1534_s4 = inlined_call_operand.vmem [shape: f32[1,8], index: 4, kind: input, shape index: {}]   ;;  %s1535_s5 = inlined_call_operand.vmem [shape: f32[64,6], index: 5, kind: output, shape index: {}]  }
   0x1   :  { %v28_v0 = vld [vmem:[%s1530_s1] sm:$0xff]  ;;  %v25_v2 = vld [vmem:[%s1531_s0 + $0x28] sm:$0xff]  ;;  %v114_v3 = vld [vmem:[%s1532_s3 + $0x38] sm:$0xff]  ;;  %s874_s1 = smov 127  }
   0x2   :  { %v20_v1 = vld [vmem:[%s1531_s0] sm:$0xff]  ;;  %73 = vmatpush.msra.mxu0 %v28_v0  ;;  %835 = vmatpush.msra.mxu3 %v28_v0  ;;  %v113_v4 = vld [vmem:[%s1532_s3 + $0x30] sm:$0xff]  ;;  %v112_v5 = vld [vmem:[%s1532_s3 + $0x28] sm:$0xff] }
   0x3   :  { %819 = vmatmul.msk.f32.vlgmr.msra.gmra.mxu0 %vm33_vm0, %v20_v1  ;;  %824 = vmatmul.msk.f32.vlgmr.msra.gmra.mxu3 %vm33_vm0, %v25_v2  ;;  %v21_v6 = vld [vmem:[%s1531_s0 + $0x8] sm:$0xff]  ;;  %v26_v7 = vld [vmem:[%s1531_s0 + $0x30] sm:$0xff]  ;;  %v111_v8 = vld [vmem:[%s1532_s3 + $0x20] sm:$0xff] }
   0x4   :  { %152 = vmatpush.msra.mxu1 %v114_v3  ;;  %836 = vmatpush.msra.mxu2 %v114_v3  ;;  %v110_v9 = vld [vmem:[%s1532_s3 + $0x18] sm:$0xff]  ;;  %v22_v10 = vld [vmem:[%s1531_s0 + $0x10] sm:$0xff]  ;;  %v24_v13 = vld [vmem:[%s1531_s0 + $0x20] sm:$0xff] }
   0x5   :  { %837 = vmatpush.msrb.mxu3 %v114_v3  ;;  %v27_v11 = vld [vmem:[%s1531_s0 + $0x38] sm:$0xff]  ;;  %v109_v14 = vld [vmem:[%s1532_s3 + $0x10] sm:$0xff]  ;;  %v108_v15 = vld [vmem:[%s1532_s3 + $0x8] sm:$0xff] }
   0x6   :  { %153 = vmatpush.msra.mxu1 %v113_v4  ;;  %838 = vmatpush.msra.mxu2 %v113_v4  ;;  %v23_v12 = vld [vmem:[%s1531_s0 + $0x18] sm:$0xff]  ;;  %v107_v16 = vld [vmem:[%s1532_s3] sm:$0xff] }
   0x7   :  { %839 = vmatpush.msrb.mxu3 %v113_v4  ;;  %v856_v17 = vld [vmem:[%s1533_s2] ss:$0 sm:$0xff] }
   0x8   :  { %154 = vmatpush.msra.mxu1 %v112_v5  ;;  %840 = vmatpush.msra.mxu2 %v112_v5  ;;  %v857_v42 = vld [vmem:[%s1534_s4] ss:$0 sm:$0xff]  ;;  %s875_s4 = smov 1  }
   0x9   :  { %841 = vmatpush.msrb.mxu3 %v112_v5 }
   0xa   :  { %155 = vmatpush.msra.mxu1 %v111_v8  ;;  %842 = vmatpush.msra.mxu2 %v111_v8 }
   0xb   :  { %820 = vmatmul.msk.f32.gmra.mxu0 %vm33_vm0, %v21_v6  ;;  %825 = vmatmul.msk.f32.gmra.mxu3 %vm33_vm0, %v26_v7 }
   0xc   :  { %843 = vmatpush.msrb.mxu3 %v111_v8  ;;  %156 = vmatpush.msra.mxu1 %v110_v9 }
   0xd   :  { %844 = vmatpush.msra.mxu2 %v110_v9 }
   0xe   :  { %845 = vmatpush.msrb.mxu3 %v110_v9  ;;  %157 = vmatpush.msra.mxu1 %v109_v14 }
   0xf   :  { %846 = vmatpush.msra.mxu2 %v109_v14 }
  0x10   :  { %847 = vmatpush.msrb.mxu3 %v109_v14  ;;  %158 = vmatpush.msra.mxu1 %v108_v15 }
  0x11   :  { %848 = vmatpush.msra.mxu2 %v108_v15 }
  0x12   :  { %849 = vmatpush.msrb.mxu3 %v108_v15  ;;  %159 = vmatpush.msra.mxu1 %v107_v16 }
  0x13   :  { %821 = vmatmul.msk.f32.gmra.mxu0 %vm33_vm0, %v22_v10  ;;  %826 = vmatmul.msk.f32.gmra.mxu3 %vm33_vm0, %v27_v11 }
  0x14   :  { %850 = vmatpush.msra.mxu2 %v107_v16  ;;  %851 = vmatpush.msrb.mxu3 %v107_v16 }
  0x1b   :  { %822 = vmatmul.msk.f32.gmra.mxu0 %vm33_vm0, %v23_v12 }
  0x23   :  { %823 = vmatmul.msk.f32.gmra.mxu0 %vm33_vm0, %v24_v13 }
  0x80   :  { %v75_v18 = vpop.f32.mrf.mxu0 }
  0x81   :  { %v76_v19 = vadd.f32 %v856_v17, %v75_v18 }
  0x83   :  { %v99_v20 = vmax.f32 %v76_v19, 0.0 }
  0x85   :  { %827 = vmatmul.msk.f32.vlgmr.msra.gmra.mxu1 %vm119_vm1, %v99_v20 }
  0x86   :  { %v90_v21 = vpop.f32.mrf.mxu3 }
  0x87   :  { %v91_v38 = vadd.f32 %v856_v17, %v90_v21 }
  0x88   :  { %v78_v22 = vpop.f32.mrf.mxu0 }
  0x89   :  { %v79_v23 = vadd.f32 %v856_v17, %v78_v22  ;;  %v104_v39 = vmax.f32 %v91_v38, 0.0 }
  0x8b   :  { %v100_v24 = vmax.f32 %v79_v23, 0.0 }
  0x8d   :  { %828 = vmatmul.msk.f32.gmra.mxu1 %vm119_vm1, %v100_v24 }
  0x8e   :  { %v93_v25 = vpop.f32.mrf.mxu3 }
  0x8f   :  { %v94_v40 = vadd.f32 %v856_v17, %v93_v25 }
  0x90   :  { %v81_v26 = vpop.f32.mrf.mxu0 }
  0x91   :  { %v82_v27 = vadd.f32 %v856_v17, %v81_v26  ;;  %v105_v41 = vmax.f32 %v94_v40, 0.0 }
  0x93   :  { %v101_v28 = vmax.f32 %v82_v27, 0.0 }
  0x95   :  { %829 = vmatmul.msk.f32.gmra.mxu1 %vm119_vm1, %v101_v28 }
  0x96   :  { %v96_v29 = vpop.f32.mrf.mxu3 }
  0x97   :  { %v97_v30 = vadd.f32 %v856_v17, %v96_v29 }
  0x98   :  { %v84_v31 = vpop.f32.mrf.mxu0 }
  0x99   :  { %v85_v32 = vadd.f32 %v856_v17, %v84_v31  ;;  %v106_v33 = vmax.f32 %v97_v30, 0.0 }
  0x9b   :  { %v102_v34 = vmax.f32 %v85_v32, 0.0  ;;  %834 = vmatmul.msk.f32.vlgmr.msrb.gmra.mxu3 %vm119_vm1, %v106_v33 }
  0x9d   :  { %830 = vmatmul.msk.f32.vlgmr.msra.gmra.mxu2 %vm119_vm1, %v102_v34 }
  0xa0   :  { %v87_v35 = vpop.f32.mrf.mxu0 }
  0xa1   :  { %v88_v36 = vadd.f32 %v856_v17, %v87_v35 }
  0xa3   :  { %v103_v37 = vmax.f32 %v88_v36, 0.0 }
  0xa5   :  { %831 = vmatmul.msk.f32.gmra.mxu2 %vm119_vm1, %v103_v37 }
  0xad   :  { %832 = vmatmul.msk.f32.gmra.mxu2 %vm119_vm1, %v104_v39 }
  0xb5   :  { %833 = vmatmul.msk.f32.gmra.mxu2 %vm119_vm1, %v105_v41 }
 0x102   :  { %v161_v43 = vpop.f32.mrf.mxu1 }
 0x103   :  { %v981_v44 = vadd.f32 %v857_v42, %v161_v43 }
 0x105   :  { %v185_v45 = vmul.f32 %v981_v44, %v981_v44 }
 0x107   :  { %201 = vrot.lane.b32.xlu0 %v185_v45, %s874_s1 }
 0x10a   :  { %v164_v46 = vpop.f32.mrf.mxu1 }
 0x10b   :  { %v986_v47 = vadd.f32 %v857_v42, %v164_v46 }
 0x10d   :  { %v186_v48 = vmul.f32 %v986_v47, %v986_v47 }
 0x10f   :  { %203 = vrot.lane.b32.xlu0 %v186_v48, %s874_s1 }
 0x112   :  { %v167_v49 = vpop.f32.mrf.mxu1 }
 0x113   :  { %v991_v50 = vadd.f32 %v857_v42, %v167_v49 }
 0x115   :  { %v187_v51 = vmul.f32 %v991_v50, %v991_v50 }
 0x117   :  { %205 = vrot.lane.b32.xlu1 %v187_v51, %s874_s1 }
 0x11e   :  { %v182_v54 = vpop.f32.mrf.mxu3 }
 0x11f   :  { %v1004_v56 = vadd.f32 %v857_v42, %v182_v54 }
 0x120   :  { %v170_v52 = vpop.f32.mrf.mxu2 }
 0x121   :  { %v996_v53 = vadd.f32 %v857_v42, %v170_v52  ;;  %v1010_v59 = vmul.f32 %v1004_v56, %v1004_v56 }
 0x123   :  { %v1000_v55 = vmul.f32 %v996_v53, %v996_v53 }
 0x125   :  { %207 = vrot.lane.b32.xlu1 %v1000_v55, %s874_s1 }
 0x128   :  { %v173_v57 = vpop.f32.mrf.mxu2 }
 0x129   :  { %v1006_v58 = vadd.f32 %v857_v42, %v173_v57 }
 0x12b   :  { %v189_v60 = vmul.f32 %v1006_v58, %v1006_v58 }
 0x12d   :  { %209 = vrot.lane.b32.xlu2 %v189_v60, %s874_s1  ;;  %215 = vrot.lane.b32.xlu1 %v1010_v59, %s874_s1 }
 0x130   :  { %v176_v61 = vpop.f32.mrf.mxu2 }
 0x131   :  { %v1017_v62 = vadd.f32 %v857_v42, %v176_v61 }
 0x133   :  { %v190_v63 = vmul.f32 %v1017_v62, %v1017_v62 }
 0x135   :  { %211 = vrot.lane.b32.xlu2 %v190_v63, %s874_s1 }
 0x138   :  { %v179_v0 = vpop.f32.mrf.mxu2 }
 0x139   :  { %v1022_v1 = vadd.f32 %v857_v42, %v179_v0 }
 0x13b   :  { %v1026_v2 = vmul.f32 %v1022_v1, %v1022_v1 }
 0x13d   :  { %213 = vrot.lane.b32.xlu0 %v1026_v2, %s874_s1 }
 0x179   :  { %v202_v3 = vpop.permute.xlu0 %201 }
 0x17a   :  { %v1030_v4 = vadd.f32 %v202_v3, %v185_v45 }
 0x17c   :  { %858 = vrsqrt.f32 %v1030_v4  ;;  %vm239_vm3 = vweird.f32 %v1030_v4  ;;  %vm313_vm5 = vcmp.gt.f32.partialorder %v1030_v4, 0.0 }
 0x181   :  { %v204_v5 = vpop.permute.xlu0 %203 }
 0x182   :  { %v859_v6 = vpop.eup %858  ;;  %v1033_v7 = vadd.f32 %v204_v5, %v186_v48 }
 0x183   :  { %v234_v8 = vmul.f32 %v859_v6, %v1030_v4  ;;  %vm240_vm2 = vweird.f32 %v859_v6 }
 0x184   :  { %860 = vrsqrt.f32 %v1033_v7  ;;  %vm241_vm4 = vmor %vm239_vm3, %vm240_vm2  ;;  %vm249_vm7 = vweird.f32 %v1033_v7  ;;  %vm314_vm9 = vcmp.gt.f32.partialorder %v1033_v7, 0.0 }
 0x185   :  { %v235_v9 = vmul.f32 %v859_v6, %v234_v8 }
 0x187   :  { %v210_v10 = vpop.permute.xlu2 %209  ;;  %v236_v11 = vmul.f32 0.5, %v235_v9 }
 0x188   :  { %v1037_v12 = vadd.f32 %v210_v10, %v189_v60 }
 0x189   :  { %v206_v13 = vpop.permute.xlu1 %205  ;;  %v237_v14 = vsub.f32 1.5, %v236_v11 }
 0x18a   :  { %v861_v15 = vpop.eup %860  ;;  %862 = vrsqrt.f32 %v1037_v12  ;;  %v1040_v16 = vadd.f32 %v206_v13, %v187_v51  ;;  %vm279_vm15 = vweird.f32 %v1037_v12  ;;  %vm317_vm1 = vcmp.gt.f32.partialorder %v1037_v12, 0.0 }
 0x18b   :  { %v238_v17 = vmul.f32 %v859_v6, %v237_v14  ;;  %v244_v18 = vmul.f32 %v861_v15, %v1033_v7  ;;  %vm250_vm6 = vweird.f32 %v861_v15 }
 0x18c   :  { %864 = vrsqrt.f32 %v1040_v16  ;;  %vm251_vm8 = vmor %vm249_vm7, %vm250_vm6  ;;  %vm259_vm11 = vweird.f32 %v1040_v16  ;;  %vm315_vm14 = vcmp.gt.f32.partialorder %v1040_v16, 0.0 }
 0x18d   :  { %v1045_v19 = vsel %vm241_vm4, %v859_v6, %v238_v17  ;;  %v245_v20 = vmul.f32 %v861_v15, %v244_v18 }
 0x18e   :  { %329 = vrot.lane.b32.xlu2 %v1045_v19, %s875_s4  ;;  %v417_v21 = vmul.f32 %v1045_v19, %v1030_v4 }
 0x18f   :  { %v212_v22 = vpop.permute.xlu2 %211  ;;  %v246_v23 = vmul.f32 0.5, %v245_v20 }
 0x190   :  { %v863_v24 = vpop.eup %862  ;;  %v1052_v25 = vadd.f32 %v212_v22, %v190_v63  ;;  %v1056_v26 = vsel %vm313_vm5, %v417_v21, 0.0 }
 0x191   :  { %v274_v27 = vmul.f32 %v863_v24, %v1037_v12  ;;  %681 = vrot.lane.b32.xlu0 %v1056_v26, %s876_s27  ;;  %v247_v28 = vsub.f32 1.5, %v246_v23  ;;  %vm280_vm13 = vweird.f32 %v863_v24 }
 0x192   :  { %v865_v29 = vpop.eup %864  ;;  %866 = vrsqrt.f32 %v1052_v25  ;;  %vm281_vm0 = vmor %vm279_vm15, %vm280_vm13  ;;  %vm289_vm7 = vweird.f32 %v1052_v25 }
 0x193   :  { %v254_v30 = vmul.f32 %v865_v29, %v1040_v16  ;;  %v248_v31 = vmul.f32 %v861_v15, %v247_v28  ;;  %v275_v32 = vmul.f32 %v863_v24, %v274_v27  ;;  %vm260_vm10 = vweird.f32 %v865_v29 }
 0x194   :  { %vm261_vm12 = vmor %vm259_vm11, %vm260_vm10 }
 0x195   :  { %v1064_v33 = vsel %vm251_vm8, %v861_v15, %v248_v31  ;;  %v255_v34 = vmul.f32 %v865_v29, %v254_v30  ;;  %v276_v35 = vmul.f32 0.5, %v275_v32 }
 0x196   :  { %v418_v36 = vmul.f32 %v1064_v33, %v1033_v7 }
 0x197   :  { %v208_v37 = vpop.permute.xlu1 %207  ;;  %v256_v38 = vmul.f32 0.5, %v255_v34  ;;  %v277_v43 = vsub.f32 1.5, %v276_v35 }
 0x198   :  { %v867_v39 = vpop.eup %866  ;;  %v1070_v40 = vadd.f32 %v208_v37, %v1000_v55  ;;  %v1074_v41 = vsel %vm314_vm9, %v418_v36, 0.0 }
 0x199   :  { %331 = vrot.lane.b32.xlu0 %v1064_v33, %s875_s4  ;;  %683 = vrot.lane.b32.xlu1 %v1074_v41, %s876_s27  ;;  %v257_v42 = vsub.f32 1.5, %v256_v38  ;;  %v284_v45 = vmul.f32 %v867_v39, %v1052_v25  ;;  %v278_v51 = vmul.f32 %v863_v24, %v277_v43  ;;  %vm290_vm3 = vweird.f32 %v867_v39 }
 0x19a   :  { %868 = vrsqrt.f32 %v1070_v40  ;;  %vm269_vm4 = vweird.f32 %v1070_v40  ;;  %vm291_vm8 = vmor %vm289_vm7, %vm290_vm3  ;;  %vm316_vm3 = vcmp.gt.f32.partialorder %v1070_v40, 0.0  ;;  %vm797_vm7 = vcmask 39936  }
 0x19b   :  { %v258_v46 = vmul.f32 %v865_v29, %v257_v42  ;;  %v285_v48 = vmul.f32 %v867_v39, %v284_v45  ;;  %v1100_v63 = vsel %vm281_vm0, %v863_v24, %v278_v51 }
 0x19c   :  { %v421_v3 = vmul.f32 %v1100_v63, %v1037_v12 }
 0x19d   :  { %v1083_v49 = vsel %vm261_vm12, %v865_v29, %v258_v46  ;;  %v286_v61 = vmul.f32 0.5, %v285_v48  ;;  %vm318_vm12 = vcmp.gt.f32.partialorder %v1052_v25, 0.0 }
 0x19e   :  { %v419_v52 = vmul.f32 %v1083_v49, %v1040_v16  ;;  %v1109_v10 = vsel %vm317_vm1, %v421_v3, 0.0 }
 0x19f   :  { %v216_v54 = vpop.permute.xlu1 %215  ;;  %v287_v5 = vsub.f32 1.5, %v286_v61 }
 0x1a0   :  { %v869_v55 = vpop.eup %868  ;;  %v1090_v57 = vadd.f32 %v216_v54, %v1010_v59  ;;  %v1094_v60 = vsel %vm315_vm14, %v419_v52, 0.0 }
 0x1a1   :  { %685 = vrot.lane.b32.xlu2 %v1094_v60, %s876_s27  ;;  %333 = vrot.lane.b32.xlu1 %v1083_v49, %s875_s4  ;;  %v264_v0 = vmul.f32 %v869_v55, %v1070_v40  ;;  %vm270_vm2 = vweird.f32 %v869_v55  ;;  %v288_v11 = vmul.f32 %v867_v39, %v287_v5 }
 0x1a2   :  { %870 = vrsqrt.f32 %v1090_v57  ;;  %vm271_vm6 = vmor %vm269_vm4, %vm270_vm2  ;;  %vm309_vm11 = vweird.f32 %v1090_v57  ;;  %vm320_vm15 = vcmp.gt.f32.partialorder %v1090_v57, 0.0 }
 0x1a3   :  { %v265_v59 = vmul.f32 %v869_v55, %v264_v0  ;;  %v1120_v18 = vsel %vm291_vm8, %v867_v39, %v288_v11  ;;  %vm806_vm8 = vcmask 48128  }
 0x1a4   :  { %v422_v22 = vmul.f32 %v1120_v18, %v1052_v25 }
 0x1a5   :  { %v266_v6 = vmul.f32 0.5, %v265_v59 }
 0x1a6   :  { %v1134_v28 = vsel %vm318_vm12, %v422_v22, 0.0 }
 0x1a7   :  { %v267_v8 = vsub.f32 1.5, %v266_v6 }
 0x1a8   :  { %v871_v9 = vpop.eup %870 }
 0x1a9   :  { %689 = vrot.lane.b32.xlu1 %v1109_v10, %s876_s27  ;;  %v268_v13 = vmul.f32 %v869_v55, %v267_v8  ;;  %v304_v14 = vmul.f32 %v871_v9, %v1090_v57  ;;  %vm310_vm10 = vweird.f32 %v871_v9 }
 0x1aa   :  { %vm311_vm13 = vmor %vm309_vm11, %vm310_vm10 }
 0x1ab   :  { %v1116_v15 = vsel %vm271_vm6, %v869_v55, %v268_v13  ;;  %v305_v17 = vmul.f32 %v871_v9, %v304_v14 }
 0x1ac   :  { %335 = vrot.lane.b32.xlu2 %v1116_v15, %s875_s4  ;;  %v420_v36 = vmul.f32 %v1116_v15, %v1070_v40 }
 0x1ad   :  { %v306_v20 = vmul.f32 0.5, %v305_v17 }
 0x1ae   :  { %v1162_v39 = vsel %vm316_vm3, %v420_v36, 0.0 }
 0x1af   :  { %v214_v21 = vpop.permute.xlu0 %213  ;;  %v307_v23 = vsub.f32 1.5, %v306_v20 }
 0x1b0   :  { %v1125_v24 = vadd.f32 %v214_v21, %v1026_v2 }
 0x1b1   :  { %339 = vrot.lane.b32.xlu1 %v1120_v18, %s875_s4  ;;  %v308_v27 = vmul.f32 %v871_v9, %v307_v23 }
 0x1b2   :  { %872 = vrsqrt.f32 %v1125_v24  ;;  %vm299_vm2 = vweird.f32 %v1125_v24  ;;  %vm319_vm6 = vcmp.gt.f32.partialorder %v1125_v24, 0.0 }
 0x1b3   :  { %v1136_v29 = vsel %vm311_vm13, %v871_v9, %v308_v27 }
 0x1b4   :  { %691 = vrot.lane.b32.xlu2 %v1134_v28, %s876_s27  ;;  %343 = vrot.lane.b32.xlu0 %v1136_v29, %s875_s4  ;;  %v424_v2 = vmul.f32 %v1136_v29, %v1090_v57 }
 0x1b6   :  { %v1147_v31 = vsel %vm320_vm15, %v424_v2, 0.0 }
 0x1b8   :  { %v873_v30 = vpop.eup %872 }
 0x1b9   :  { %695 = vrot.lane.b32.xlu1 %v1147_v31, %s876_s27  ;;  %v294_v32 = vmul.f32 %v873_v30, %v1125_v24  ;;  %vm300_vm0 = vweird.f32 %v873_v30 }
 0x1ba   :  { %vm301_vm4 = vmor %vm299_vm2, %vm300_vm0 }
 0x1bb   :  { %v295_v34 = vmul.f32 %v873_v30, %v294_v32 }
 0x1bc   :  { %337 = vrot.lane.b32.xlu0 %v1100_v63, %s875_s4 }
 0x1bd   :  { %v296_v35 = vmul.f32 0.5, %v295_v34 }
 0x1bf   :  { %v297_v37 = vsub.f32 1.5, %v296_v35 }
 0x1c1   :  { %717 = vrot.lane.b32.xlu1 %v991_v50, %s875_s4  ;;  %v298_v38 = vmul.f32 %v873_v30, %v297_v37 }
 0x1c3   :  { %v1164_v42 = vsel %vm301_vm4, %v873_v30, %v298_v38  ;;  %v401_v30 = vmul.f32 %v1045_v19, %v981_v44 }
 0x1c4   :  { %687 = vrot.lane.b32.xlu0 %v1162_v39, %s876_s27  ;;  %341 = vrot.lane.b32.xlu2 %v1164_v42, %s875_s4  ;;  %v423_v43 = vmul.f32 %v1164_v42, %v1125_v24 }
 0x1c5   :  { %v1227_v32 = vsel %vm313_vm5, %v401_v30, 1.0 }
 0x1c6   :  { %v1179_v45 = vsel %vm319_vm6, %v423_v43, 0.0  ;;  %v505_v38 = vmul.f32 1.2246469e-16, %v1227_v32  ;;  %v569_v43 = vmul.f32 -1.0, %v1227_v32 }
 0x1cc   :  { %715 = vrot.lane.b32.xlu0 %v986_v47, %s875_s4  ;;  %713 = vrot.lane.b32.xlu2 %v981_v44, %s875_s4 }
 0x1d4   :  { %719 = vrot.lane.b32.xlu2 %v996_v53, %s875_s4  ;;  %693 = vrot.lane.b32.xlu0 %v1179_v45, %s876_s27 }
 0x1e8   :  { %v330_v46 = vpop.permute.xlu2 %329 }
 0x1e9   :  { %v353_v48 = vmul.f32 %v330_v46, %v981_v44 }
 0x1eb   :  { %369 = vrot.lane.b32.xlu1 %v353_v48, %s874_s1 }
 0x1fb   :  { %v1187_v51 = vpop.permute.xlu2 %685 }
 0x203   :  { %v1189_v52 = vpop.permute.xlu0 %681 }
 0x206   :  { %v336_v54 = vpop.permute.xlu2 %335 }
 0x207   :  { %v356_v55 = vmul.f32 %v336_v54, %v996_v53  ;;  %v402_v54 = vmul.f32 %v1064_v33, %v986_v47 }
 0x209   :  { %375 = vrot.lane.b32.xlu1 %v356_v55, %s874_s1  ;;  %v1245_v4 = vsel %vm314_vm9, %v402_v54, 1.0 }
 0x20b   :  { %v1193_v61 = vpop.permute.xlu1 %683  ;;  %v332_v0 = vpop.permute.xlu0 %331 }
 0x20c   :  { %v354_v59 = vmul.f32 %v332_v0, %v986_v47 }
 0x20e   :  { %371 = vrot.lane.b32.xlu2 %v354_v59, %s874_s1  ;;  %v1198_v6 = vpop.permute.xlu2 %691 }
 0x213   :  { %v334_v3 = vpop.permute.xlu1 %333 }
 0x214   :  { %v355_v5 = vmul.f32 %v334_v3, %v991_v50 }
 0x216   :  { %373 = vrot.lane.b32.xlu0 %v355_v5, %s874_s1 }
 0x21b   :  { %v1201_v8 = vpop.permute.xlu1 %689 }
 0x21e   :  { %v342_v9 = vpop.permute.xlu2 %341 }
 0x21f   :  { %v359_v11 = vmul.f32 %v342_v9, %v1022_v1  ;;  %v570_v9 = vmul.f32 -1.0, %v1245_v4 }
 0x221   :  { %381 = vrot.lane.b32.xlu1 %v359_v11, %s874_s1  ;;  %v506_v11 = vmul.f32 1.2246469e-16, %v1245_v4 }
 0x223   :  { %v340_v13 = vpop.permute.xlu1 %339 }
 0x224   :  { %v358_v14 = vmul.f32 %v340_v13, %v1017_v62 }
 0x226   :  { %379 = vrot.lane.b32.xlu0 %v358_v14, %s874_s1  ;;  %v344_v17 = vpop.permute.xlu0 %343  ;;  %v1221_v2 = vpop.permute.xlu2 %713 }
 0x227   :  { %v360_v20 = vmul.f32 %v344_v17, %v1004_v56 }
 0x229   :  { %723 = vrot.lane.b32.xlu1 %v1017_v62, %s875_s4  ;;  %383 = vrot.lane.b32.xlu2 %v360_v20, %s874_s1 }
 0x22b   :  { %v1217_v23 = vpop.permute.xlu1 %695 }
 0x22e   :  { %721 = vrot.lane.b32.xlu0 %v1006_v58, %s875_s4  ;;  %v338_v21 = vpop.permute.xlu0 %337  ;;  %v1237_v46 = vpop.permute.xlu2 %719 }
 0x22f   :  { %v357_v22 = vmul.f32 %v338_v21, %v1006_v58 }
 0x231   :  { %377 = vrot.lane.b32.xlu2 %v357_v22, %s874_s1  ;;  %v408_v22 = vmul.f32 %v1136_v29, %v1004_v56 }
 0x233   :  { %v1219_v27 = vpop.permute.xlu1 %717 }
 0x236   :  { %v1255_v13 = vpop.permute.xlu0 %687 }
 0x239   :  { %725 = vrot.lane.b32.xlu2 %v1022_v1, %s875_s4 }
 0x23e   :  { %v1259_v7 = vpop.permute.xlu0 %715 }
 0x246   :  { %v1263_v30 = vpop.permute.xlu0 %693 }
 0x25d   :  { %v370_v34 = vpop.permute.xlu1 %369 }
 0x25e   :  { %v1231_v35 = vsel %vm313_vm5, %v370_v34, 0.0  ;;  %v1267_v34 = vsel %vm320_vm15, %v408_v22, 1.0  ;;  %vm761_vm5 = vcmask 7168  }
 0x25f   :  { %v497_v36 = vmul.f32 -1.0, %v1231_v35  ;;  %v577_v37 = vmul.f32 1.2246469e-16, %v1231_v35 }
 0x261   :  { %v513_v19 = vadd.f32 %v505_v38, %v497_v36  ;;  %v585_v48 = vsub.f32 %v569_v43, %v577_v37  ;;  %v403_v36 = vmul.f32 %v1083_v49, %v991_v50  ;;  %v404_v43 = vmul.f32 %v1116_v15, %v996_v53 }
 0x263   :  { %v521_v55 = vmul.f32 0.5, %v513_v19  ;;  %v593_v0 = vmul.f32 0.5, %v585_v48  ;;  %v576_v48 = vmul.f32 -1.0, %v1267_v34  ;;  %v1285_v49 = vsel %vm315_vm14, %v403_v36, 1.0 }
 0x264   :  { %v1289_v15 = vsel %vm316_vm3, %v404_v43, 1.0 }
 0x265   :  { %537 = vrot.lane.b32.xlu0 %v521_v55, %s877_s28  ;;  %609 = vrot.lane.b32.xlu2 %v593_v0, %s877_s28 }
 0x268   :  { %v372_v59 = vpop.permute.xlu2 %371 }
 0x269   :  { %v1249_v3 = vsel %vm314_vm9, %v372_v59, 0.0  ;;  %vm770_vm9 = vcmask 15360  }
 0x26a   :  { %v498_v5 = vmul.f32 -1.0, %v1249_v3  ;;  %v578_v33 = vmul.f32 1.2246469e-16, %v1249_v3 }
 0x26c   :  { %v586_v14 = vsub.f32 %v570_v9, %v578_v33  ;;  %v514_v17 = vadd.f32 %v506_v11, %v498_v5  ;;  %v571_v11 = vmul.f32 -1.0, %v1285_v49 }
 0x26e   :  { %v594_v20 = vmul.f32 0.5, %v586_v14  ;;  %v522_v21 = vmul.f32 0.5, %v514_v17  ;;  %v507_v14 = vmul.f32 1.2246469e-16, %v1285_v49  ;;  %v508_v17 = vmul.f32 1.2246469e-16, %v1289_v15 }
 0x270   :  { %611 = vrot.lane.b32.xlu0 %v594_v20, %s877_s28  ;;  %539 = vrot.lane.b32.xlu1 %v522_v21, %s877_s28  ;;  %v405_v20 = vmul.f32 %v1100_v63, %v1006_v58  ;;  %v512_v63 = vmul.f32 1.2246469e-16, %v1267_v34 }
 0x27b   :  { %v376_v37 = vpop.permute.xlu1 %375 }
 0x27c   :  { %v1281_v54 = vsel %vm316_vm3, %v376_v37, 0.0 }
 0x27d   :  { %v500_v0 = vmul.f32 -1.0, %v1281_v54  ;;  %v580_v22 = vmul.f32 1.2246469e-16, %v1281_v54 }
 0x27f   :  { %v516_v36 = vadd.f32 %v508_v17, %v500_v0 }
 0x281   :  { %v524_v0 = vmul.f32 0.5, %v516_v36 }
 0x283   :  { %v384_v38 = vpop.permute.xlu2 %383 }
 0x284   :  { %v1275_v19 = vsel %vm320_vm15, %v384_v38, 0.0 }
 0x285   :  { %v584_v29 = vmul.f32 1.2246469e-16, %v1275_v19  ;;  %v504_v37 = vmul.f32 -1.0, %v1275_v19 }
 0x287   :  { %v592_v55 = vsub.f32 %v576_v48, %v584_v29  ;;  %v1312_v48 = vsel %vm317_vm1, %v405_v20, 1.0 }
 0x288   :  { %v374_v57 = vpop.permute.xlu0 %373  ;;  %v573_v12 = vmul.f32 -1.0, %v1312_v48 }
 0x289   :  { %v1294_v59 = vsel %vm315_vm14, %v374_v57, 0.0  ;;  %v600_v5 = vmul.f32 0.5, %v592_v55  ;;  %v572_v55 = vmul.f32 -1.0, %v1289_v15  ;;  %vm779_vm14 = vcmask 23552  }
 0x28a   :  { %v499_v33 = vmul.f32 -1.0, %v1294_v59  ;;  %v579_v9 = vmul.f32 1.2246469e-16, %v1294_v59 }
 0x28b   :  { %623 = vrot.lane.b32.xlu0 %v600_v5, %s877_s28  ;;  %v378_v40 = vpop.permute.xlu2 %377  ;;  %v520_v5 = vadd.f32 %v512_v63, %v504_v37 }
 0x28c   :  { %v587_v16 = vsub.f32 %v571_v11, %v579_v9  ;;  %v515_v21 = vadd.f32 %v507_v14, %v499_v33  ;;  %v1308_v38 = vsel %vm317_vm1, %v378_v40, 0.0  ;;  %v588_v33 = vsub.f32 %v572_v55, %v580_v22 }
 0x28d   :  { %v581_v57 = vmul.f32 1.2246469e-16, %v1308_v38  ;;  %v406_v9 = vmul.f32 %v1120_v18, %v1017_v62  ;;  %v501_v14 = vmul.f32 -1.0, %v1308_v38  ;;  %v528_v40 = vmul.f32 0.5, %v520_v5 }
 0x28e   :  { %v595_v43 = vmul.f32 0.5, %v587_v16  ;;  %v523_v29 = vmul.f32 0.5, %v515_v21  ;;  %v596_v17 = vmul.f32 0.5, %v588_v33  ;;  %v509_v18 = vmul.f32 1.2246469e-16, %v1312_v48 }
 0x28f   :  { %v589_v11 = vsub.f32 %v573_v12, %v581_v57  ;;  %v1326_v20 = vsel %vm318_vm12, %v406_v9, 1.0  ;;  %v407_v22 = vmul.f32 %v1164_v42, %v1022_v1  ;;  %vm788_vm1 = vcmask 31744  }
 0x290   :  { %613 = vrot.lane.b32.xlu1 %v595_v43, %s877_s28  ;;  %541 = vrot.lane.b32.xlu2 %v523_v29, %s877_s28  ;;  %v517_v29 = vadd.f32 %v509_v18, %v501_v14  ;;  %v510_v63 = vmul.f32 1.2246469e-16, %v1326_v20  ;;  %v574_v9 = vmul.f32 -1.0, %v1326_v20 }
 0x291   :  { %v597_v37 = vmul.f32 0.5, %v589_v11  ;;  %v1346_v42 = vsel %vm319_vm6, %v407_v22, 1.0  ;;  %v465_v22 = vmul.f32 0.0, %v1231_v35 }
 0x292   :  { %v525_v5 = vmul.f32 0.5, %v517_v29  ;;  %v575_v12 = vmul.f32 -1.0, %v1346_v42 }
 0x293   :  { %543 = vrot.lane.b32.xlu0 %v524_v0, %s877_s28  ;;  %v382_v16 = vpop.permute.xlu1 %381 }
 0x294   :  { %v1341_v55 = vsel %vm319_vm6, %v382_v16, 0.0 }
 0x295   :  { %v583_v25 = vmul.f32 1.2246469e-16, %v1341_v55  ;;  %v503_v11 = vmul.f32 -1.0, %v1341_v55 }
 0x297   :  { %v591_v24 = vsub.f32 %v575_v12, %v583_v25 }
 0x298   :  { %551 = vrot.lane.b32.xlu1 %v528_v40, %s877_s28  ;;  %615 = vrot.lane.b32.xlu2 %v596_v17, %s877_s28  ;;  %v380_v21 = vpop.permute.xlu0 %379  ;;  %v511_v40 = vmul.f32 1.2246469e-16, %v1346_v42 }
 0x299   :  { %v1335_v36 = vsel %vm318_vm12, %v380_v21, 0.0  ;;  %v599_v21 = vmul.f32 0.5, %v591_v24 }
 0x29a   :  { %v502_v43 = vmul.f32 -1.0, %v1335_v36  ;;  %v582_v0 = vmul.f32 1.2246469e-16, %v1335_v36  ;;  %v519_v17 = vadd.f32 %v511_v40, %v503_v11 }
 0x29b   :  { %617 = vrot.lane.b32.xlu0 %v597_v37, %s877_s28  ;;  %v1368_v37 = vpop.permute.xlu2 %725 }
 0x29c   :  { %v518_v57 = vadd.f32 %v510_v63, %v502_v43  ;;  %v590_v14 = vsub.f32 %v574_v9, %v582_v0  ;;  %v527_v18 = vmul.f32 0.5, %v519_v17  ;;  %v473_v43 = vsub.f32 %v1227_v32, %v465_v22 }
 0x29d   :  { %v435_v17 = vmul.f32 0.0, %v1285_v49 }
 0x29e   :  { %v526_v33 = vmul.f32 0.5, %v518_v57  ;;  %v598_v16 = vmul.f32 0.5, %v590_v14  ;;  %v481_v29 = vmul.f32 0.5, %v473_v43 }
 0x2a0   :  { %545 = vrot.lane.b32.xlu1 %v525_v5, %s877_s28  ;;  %547 = vrot.lane.b32.xlu2 %v526_v33, %s877_s28  ;;  %v434_v33 = vmul.f32 0.0, %v1245_v4 }
 0x2a2   :  { %v442_v9 = vadd.f32 %v434_v33, %v1249_v3 }
 0x2a3   :  { %727 = vrot.lane.b32.xlu0 %v1004_v56, %s875_s4 }
 0x2a4   :  { %v450_v11 = vmul.f32 0.5, %v442_v9 }
 0x2a8   :  { %619 = vrot.lane.b32.xlu1 %v598_v16, %s877_s28  ;;  %621 = vrot.lane.b32.xlu2 %v599_v21, %s877_s28  ;;  %v443_v16 = vadd.f32 %v435_v17, %v1294_v59  ;;  %v468_v21 = vmul.f32 0.0, %v1281_v54  ;;  %v436_v17 = vmul.f32 0.0, %v1289_v15 }
 0x2ab   :  { %549 = vrot.lane.b32.xlu0 %v527_v18, %s877_s28  ;;  %v451_v18 = vmul.f32 0.5, %v443_v16  ;;  %v444_v16 = vadd.f32 %v436_v17, %v1281_v54 }
 0x2b0   :  { %737 = vrot.lane.b32.xlu1 %v981_v44, %s874_s1  ;;  %739 = vrot.lane.b32.xlu2 %v986_v47, %s874_s1  ;;  %v1376_v47 = vpop.permute.xlu0 %721 }
 0x2b3   :  { %741 = vrot.lane.b32.xlu0 %v991_v50, %s874_s1  ;;  %v433_v50 = vmul.f32 0.0, %v1227_v32 }
 0x2b5   :  { %v441_v57 = vadd.f32 %v433_v50, %v1231_v35  ;;  %v472_v50 = vmul.f32 0.0, %v1275_v19 }
 0x2b7   :  { %v449_v25 = vmul.f32 0.5, %v441_v57 }
 0x2b8   :  { %743 = vrot.lane.b32.xlu1 %v996_v53, %s874_s1  ;;  %745 = vrot.lane.b32.xlu2 %v1006_v58, %s874_s1  ;;  %v466_v53 = vmul.f32 0.0, %v1249_v3  ;;  %v1383_v58 = vpop.permute.xlu1 %723 }
 0x2ba   :  { %v474_v12 = vsub.f32 %v1245_v4, %v466_v53  ;;  %v476_v4 = vsub.f32 %v1289_v15, %v468_v21  ;;  %v471_v53 = vmul.f32 0.0, %v1341_v55 }
 0x2bc   :  { %v482_v14 = vmul.f32 0.5, %v474_v12  ;;  %v484_v43 = vmul.f32 0.5, %v476_v4 }
 0x2bf   :  { %v610_v44 = vpop.permute.xlu2 %609 }
 0x2c0   :  { %v633_v63 = vadd.f32 %v610_v44, %v481_v29 }
 0x2c2   :  { %649 = vrot.lane.b32.xlu1 %v633_v63, %s875_s4  ;;  %v438_v63 = vmul.f32 0.0, %v1326_v20 }
 0x2c4   :  { %v446_v57 = vadd.f32 %v438_v63, %v1335_v36 }
 0x2c6   :  { %v454_v33 = vmul.f32 0.5, %v446_v57 }
 0x2d7   :  { %v538_v0 = vpop.permute.xlu0 %537 }
 0x2d8   :  { %v1380_v5 = vadd.f32 %v538_v0, %v449_v25  ;;  %v480_v25 = vsub.f32 %v1267_v34, %v472_v50  ;;  %v467_v0 = vmul.f32 0.0, %v1294_v59 }
 0x2e2   :  { %v540_v24 = vpop.permute.xlu1 %539  ;;  %v612_v32 = vpop.permute.xlu0 %611 }
 0x2e3   :  { %v1388_v40 = vadd.f32 %v540_v24, %v450_v11  ;;  %v634_v35 = vadd.f32 %v612_v32, %v482_v14  ;;  %v488_v11 = vmul.f32 0.5, %v480_v25  ;;  %v475_v24 = vsub.f32 %v1285_v49, %v467_v0 }
 0x2e4   :  { %v479_v32 = vsub.f32 %v1346_v42, %v471_v53  ;;  %v452_v49 = vmul.f32 0.5, %v444_v16  ;;  %v437_v53 = vmul.f32 0.0, %v1312_v48 }
 0x2e5   :  { %651 = vrot.lane.b32.xlu2 %v634_v35, %s875_s4  ;;  %v483_v59 = vmul.f32 0.5, %v475_v24 }
 0x2e6   :  { %v487_v21 = vmul.f32 0.5, %v479_v32 }
 0x2ea   :  { %v542_v22 = vpop.permute.xlu2 %541 }
 0x2eb   :  { %v1394_v3 = vadd.f32 %v542_v22, %v451_v18 }
 0x2f2   :  { %v616_v29 = vpop.permute.xlu2 %615 }
 0x2f3   :  { %v636_v44 = vadd.f32 %v616_v29, %v484_v43  ;;  %v440_v29 = vmul.f32 0.0, %v1267_v34 }
 0x2f5   :  { %655 = vrot.lane.b32.xlu1 %v636_v44, %s875_s4  ;;  %v469_v44 = vmul.f32 0.0, %v1308_v38  ;;  %v448_v63 = vadd.f32 %v440_v29, %v1275_v19  ;;  %v470_v19 = vmul.f32 0.0, %v1335_v36 }
 0x2f7   :  { %v477_v54 = vsub.f32 %v1312_v48, %v469_v44  ;;  %v456_v57 = vmul.f32 0.5, %v448_v63 }
 0x2fa   :  { %v548_v9 = vpop.permute.xlu2 %547 }
 0x2fb   :  { %v1404_v12 = vadd.f32 %v548_v9, %v454_v33  ;;  %v485_v33 = vmul.f32 0.5, %v477_v54  ;;  %v445_v9 = vadd.f32 %v437_v53, %v1308_v38 }
 0x2fd   :  { %v624_v14 = vpop.permute.xlu0 %623 }
 0x2fe   :  { %v640_v35 = vadd.f32 %v624_v14, %v488_v11  ;;  %v453_v14 = vmul.f32 0.5, %v445_v9 }
 0x300   :  { %663 = vrot.lane.b32.xlu2 %v640_v35, %s875_s4  ;;  %v478_v35 = vsub.f32 %v1326_v20, %v470_v19 }
 0x302   :  { %v614_v18 = vpop.permute.xlu1 %613  ;;  %v622_v22 = vpop.permute.xlu2 %621  ;;  %v486_v48 = vmul.f32 0.5, %v478_v35 }
 0x303   :  { %v635_v4 = vadd.f32 %v614_v18, %v483_v59  ;;  %v639_v43 = vadd.f32 %v622_v22, %v487_v21 }
 0x305   :  { %653 = vrot.lane.b32.xlu0 %v635_v4, %s875_s4  ;;  %661 = vrot.lane.b32.xlu1 %v639_v43, %s875_s4  ;;  %v544_v15 = vpop.permute.xlu0 %543 }
 0x306   :  { %v564_v50 = vadd.f32 %v544_v15, %v452_v49 }
 0x30a   :  { %v552_v25 = vpop.permute.xlu1 %551  ;;  %v740_v59 = vpop.permute.xlu2 %739 }
 0x30b   :  { %v568_v0 = vadd.f32 %v552_v25, %v456_v57 }
 0x30d   :  { %749 = vrot.lane.b32.xlu1 %v1022_v1, %s874_s1  ;;  %v618_v34 = vpop.permute.xlu0 %617 }
 0x30e   :  { %v637_v11 = vadd.f32 %v618_v34, %v485_v33 }
 0x310   :  { %657 = vrot.lane.b32.xlu2 %v637_v11, %s875_s4 }
 0x312   :  { %v546_v24 = vpop.permute.xlu1 %545  ;;  %v746_v21 = vpop.permute.xlu2 %745 }
 0x313   :  { %v565_v32 = vadd.f32 %v546_v24, %v453_v14 }
 0x315   :  { %v728_v29 = vpop.permute.xlu0 %727 }
 0x318   :  { %751 = vrot.lane.b32.xlu2 %v1004_v56, %s874_s1 }
 0x31a   :  { %v620_v17 = vpop.permute.xlu1 %619 }
 0x31b   :  { %v638_v16 = vadd.f32 %v620_v17, %v486_v48 }
 0x31d   :  { %659 = vrot.lane.b32.xlu0 %v638_v16, %s875_s4  ;;  %v550_v49 = vpop.permute.xlu0 %549 }
 0x322   :  { %v738_v1 = vpop.permute.xlu1 %737 }
 0x325   :  { %747 = vrot.lane.b32.xlu0 %v1017_v62, %s874_s1 }
 0x32a   :  { %v744_v38 = vpop.permute.xlu1 %743 }
 0x334   :  { %v650_v36 = vpop.permute.xlu1 %649 }
 0x335   :  { %v762_v20 = vsel %vm761_vm5, %v1380_v5, %v650_v36 }
 0x336   :  { %v771_v56 = vsel %vm770_vm9, %v762_v20, %v1189_v52 }
 0x337   :  { %v780_v18 = vsel %vm779_vm14, %v771_v56, %v1221_v2 }
 0x338   :  { %v789_v62 = vsel %vm788_vm1, %v780_v18, %v1056_v26 }
 0x339   :  { %v798_v22 = vsel %vm797_vm7, %v789_v62, %v738_v1 }
 0x33a   :  { %807 = vst.msk [vmem:[%s1535_s5] sm:$0xff] %vm806_vm8, %v798_v22 }
 0x33f   :  { %v652_v5 = vpop.permute.xlu2 %651 }
 0x340   :  { %v763_v4 = vsel %vm761_vm5, %v1388_v40, %v652_v5 }
 0x341   :  { %v772_v52 = vsel %vm770_vm9, %v763_v4, %v1193_v61 }
 0x342   :  { %v781_v2 = vsel %vm779_vm14, %v772_v52, %v1259_v7 }
 0x343   :  { %v790_v26 = vsel %vm788_vm1, %v781_v2, %v1074_v41 }
 0x344   :  { %v799_v43 = vsel %vm797_vm7, %v790_v26, %v740_v59 }
 0x345   :  { %808 = vst.msk [vmem:[%s1535_s5 + $0x8] sm:$0xff] %vm806_vm8, %v799_v43 }
 0x35a   :  { %v664_v44 = vpop.permute.xlu2 %663 }
 0x35b   :  { %v769_v61 = vsel %vm761_vm5, %v568_v0, %v664_v44  ;;  %v742_v0 = vpop.permute.xlu0 %741 }
 0x35c   :  { %v778_v25 = vsel %vm770_vm9, %v769_v61, %v1217_v23 }
 0x35d   :  { %v787_v33 = vsel %vm779_vm14, %v778_v25, %v728_v29 }
 0x367   :  { %v656_v40 = vpop.permute.xlu1 %655 }
 0x368   :  { %v765_v15 = vsel %vm761_vm5, %v564_v50, %v656_v40 }
 0x369   :  { %v774_v7 = vsel %vm770_vm9, %v765_v15, %v1255_v13 }
 0x36a   :  { %v783_v41 = vsel %vm779_vm14, %v774_v7, %v1237_v46  ;;  %v658_v63 = vpop.permute.xlu2 %657 }
 0x36b   :  { %v792_v54 = vsel %vm788_vm1, %v783_v41, %v1162_v39  ;;  %v766_v57 = vsel %vm761_vm5, %v565_v32, %v658_v63  ;;  %v439_v39 = vmul.f32 0.0, %v1346_v42 }
 0x36c   :  { %v801_v53 = vsel %vm797_vm7, %v792_v54, %v744_v38  ;;  %v775_v50 = vsel %vm770_vm9, %v766_v57, %v1201_v8 }
 0x36d   :  { %810 = vst.msk [vmem:[%s1535_s5 + $0x18] sm:$0xff] %vm806_vm8, %v801_v53  ;;  %v784_v46 = vsel %vm779_vm14, %v775_v50, %v1376_v47  ;;  %v447_v8 = vadd.f32 %v439_v39, %v1341_v55  ;;  %v796_v47 = vsel %vm788_vm1, %v787_v33, %v1147_v31 }
 0x36e   :  { %v793_v13 = vsel %vm788_vm1, %v784_v46, %v1109_v10 }
 0x36f   :  { %v802_v23 = vsel %vm797_vm7, %v793_v13, %v746_v21  ;;  %v455_v9 = vmul.f32 0.5, %v447_v8 }
 0x370   :  { %811 = vst.msk [vmem:[%s1535_s5 + $0x20] sm:$0xff] %vm806_vm8, %v802_v23 }
 0x371   :  { %v567_v10 = vadd.f32 %v550_v49, %v455_v9 }
 0x372   :  { %v752_v34 = vpop.permute.xlu2 %751 }
 0x373   :  { %v805_v42 = vsel %vm797_vm7, %v796_v47, %v752_v34 }
 0x374   :  { %814 = vst.msk [vmem:[%s1535_s5 + $0x38] sm:$0xff] %vm806_vm8, %v805_v42 }
 0x377   :  { %v662_v11 = vpop.permute.xlu1 %661  ;;  %v654_v55 = vpop.permute.xlu0 %653 }
 0x378   :  { %v768_v19 = vsel %vm761_vm5, %v567_v10, %v662_v11  ;;  %v764_v14 = vsel %vm761_vm5, %v1394_v3, %v654_v55 }
 0x379   :  { %v777_v24 = vsel %vm770_vm9, %v768_v19, %v1263_v30  ;;  %v773_v31 = vsel %vm770_vm9, %v764_v14, %v1187_v51 }
 0x37a   :  { %v782_v32 = vsel %vm779_vm14, %v773_v31, %v1219_v27  ;;  %v786_v17 = vsel %vm779_vm14, %v777_v24, %v1368_v37 }
 0x37b   :  { %v791_v35 = vsel %vm788_vm1, %v782_v32, %v1094_v60  ;;  %v795_v51 = vsel %vm788_vm1, %v786_v17, %v1179_v45 }
 0x37c   :  { %v800_v48 = vsel %vm797_vm7, %v791_v35, %v742_v0 }
 0x37d   :  { %809 = vst.msk [vmem:[%s1535_s5 + $0x10] sm:$0xff] %vm806_vm8, %v800_v48 }
 0x37f   :  { %v750_v30 = vpop.permute.xlu1 %749 }
 0x380   :  { %v804_v3 = vsel %vm797_vm7, %v795_v51, %v750_v30 }
 0x381   :  { %813 = vst.msk [vmem:[%s1535_s5 + $0x30] sm:$0xff] %vm806_vm8, %v804_v3 }
 0x38f   :  { %v660_v60 = vpop.permute.xlu0 %659 }
 0x390   :  { %v767_v27 = vsel %vm761_vm5, %v1404_v12, %v660_v60 }
 0x391   :  { %v776_v37 = vsel %vm770_vm9, %v767_v27, %v1198_v6 }
 0x392   :  { %v785_v16 = vsel %vm779_vm14, %v776_v37, %v1383_v58 }
 0x393   :  { %v794_v45 = vsel %vm788_vm1, %v785_v16, %v1134_v28 }
 0x397   :  { %v748_v1 = vpop.permute.xlu0 %747 }
 0x398   :  { %v803_v38 = vsel %vm797_vm7, %v794_v45, %v748_v1 }
 0x399   :  { %812 = vst.msk [vmem:[%s1535_s5 + $0x28] sm:$0xff] %vm806_vm8, %v803_v38 }

</bundles_post_ra>
